<compile_context>
chip_gen: v6e
topology: v6e:2x2x1
jax: 0.10.0
libtpu: 0.0.40
codegen_flags: <defaults>
</compile_context>

<pallas_src>
import jax
import jax.numpy as jnp
from jax.experimental import pallas as pl
from jax.experimental.pallas import tpu as pltpu

NUM_FILTERS = 32        # args.num_filters
NUM_CLASS = 638         # args.num_class
NUM_CLASS_PAD = 640     # padded to 5*128 for lane-dense logits / aligned wfc slab
EMB_DIM = 32            # emb.shape[1]
VOCAB = 100
VOCAB_PAD = 128         # lane-dense one-hot / contraction dim
SEQ = 12                # sequence length fed to forward (x.view(1, seq))


def ltr_kernel(idx_ref, emb_ref, wcat_ref, bcat_ref, wfc_ref, bfc_ref,
               feat_ref, logits_ref):
    idx = idx_ref[...]                               # (S, 1) int32
    S = idx.shape[0]
    Vp, E = emb_ref.shape                            # (128, 32)
    F = NUM_FILTERS

    # --- Embedding lookup as one-hot @ emb_pad (single small MXU matmul, no gather op). ---
    iota = jax.lax.broadcasted_iota(jnp.int32, (S, Vp), 1)
    onehot = (iota == idx).astype(jnp.float32)                                   # (S, 128)
    x = jnp.dot(onehot, emb_ref[...], preferred_element_type=jnp.float32)        # (S, E)

    # --- All conv branches in ONE matmul: P = x @ W_cat, W_cat packs every (k, row) slice. ---
    p = jnp.dot(x, wcat_ref[...], preferred_element_type=jnp.float32)            # (S, 10F)
    b = bcat_ref[...]                                                            # (1, 4F)

    # Conv2d(1,F,(k,E)) + ReLU + global max-pool, reconstructed from shifted slices of P.
    hs = []
    col = 0
    for k in range(1, 5):            # k=5 branch is dead in the module -> not computed
        L = S - k + 1
        acc = p[0:L, col:col + F]
        col += F
        for i in range(1, k):
            acc = acc + p[i:i + L, col:col + F]
            col += F
        acc = jnp.maximum(acc + b[:, (k - 1) * F:k * F], 0.0)   # bias + ReLU
        hs.append(jnp.max(acc, axis=0, keepdims=True))          # (1, F)

    h1, h2, h3, h4 = hs
    hcat = jnp.concatenate([h1, h2, h3, h4], axis=1)            # (1, 4F)

    # torch.cat((h1, h2, h3, h4, h4), 1) -- duplicated h4 is intentional (module bug kept).
    feat_ref[...] = jnp.concatenate([hcat, h4], axis=1)         # single store

    # Single FC matmul: duplicated-h4 columns were pre-folded into wfc_eff offline.
    logits_ref[...] = (jnp.dot(hcat, wfc_ref[...], preferred_element_type=jnp.float32)
                       + bfc_ref[...])                          # (1, 640), lane-dense


def init_params(key):
    keys = jax.random.split(key, 13)
    params = {"emb": jax.random.normal(keys[0], (VOCAB, EMB_DIM), jnp.float32)}

    # Raw (reference-layout) conv / fc parameters.
    for k in range(1, 6):
        wk = 0.1 * jax.random.normal(keys[k], (NUM_FILTERS, 1, k, EMB_DIM), jnp.float32)
        bk = 0.1 * jax.random.normal(keys[5 + k], (NUM_FILTERS,), jnp.float32)
        # PyTorch conv layout (F, 1, k, E) -> (k, E, F) -> (k*E, F)
        params[f"w{k}"] = jnp.transpose(wk[:, 0], (1, 2, 0)).reshape(k * EMB_DIM, NUM_FILTERS)
        params[f"b{k}"] = bk.reshape(1, NUM_FILTERS)
    wfc = 0.1 * jax.random.normal(keys[11], (NUM_CLASS, 5 * NUM_FILTERS), jnp.float32)
    bfc = 0.1 * jax.random.normal(keys[12], (NUM_CLASS,), jnp.float32)
    params["wfc"] = wfc.T                       # (5F, C)
    params["bfc"] = bfc.reshape(1, NUM_CLASS)

    # ---- Packed kernel-side layouts ----
    # Vocab padded to 128 rows (zeros); indices are always < VOCAB so results are unchanged.
    params["emb_pad"] = jnp.pad(params["emb"], ((0, VOCAB_PAD - VOCAB), (0, 0)))  # (128, 32)

    # W_cat: (E, 10F) column blocks ordered (k=1,i=0),(k=2,i=0),(k=2,i=1),...,(k=4,i=3).
    slabs = []
    for k in range(1, 5):
        wk_kEF = params[f"w{k}"].reshape(k, EMB_DIM, NUM_FILTERS)
        for i in range(k):
            slabs.append(wk_kEF[i])                             # (E, F)
    params["wcat"] = jnp.concatenate(slabs, axis=1)             # (32, 320)
    params["bcat"] = jnp.concatenate([params[f"b{k}"] for k in range(1, 5)], axis=1)  # (1, 128)

    # Fold the duplicated-h4 FC columns: wfc_eff[96:128,:] = wfc[96:128,:] + wfc[128:160,:].
    F = NUM_FILTERS
    wfc_t = params["wfc"]                                       # (160, 638)
    wfc_eff = wfc_t[:4 * F, :].at[3 * F:4 * F, :].add(wfc_t[4 * F:5 * F, :])
    pad_c = NUM_CLASS_PAD - NUM_CLASS
    params["wfc_eff"] = jnp.pad(wfc_eff, ((0, 0), (0, pad_c)))  # (128, 640)
    params["bfc_pad"] = jnp.pad(params["bfc"], ((0, 0), (0, pad_c)))  # (1, 640)
    return params


def learn_to_rank_forward(x_idx, params):
    # x = x.view(1, x.size(1)); self.emb / dropouts handled in-kernel (eval semantics).
    x_idx = x_idx.reshape(1, x_idx.shape[-1])
    idx_col = x_idx[0].astype(jnp.int32).reshape(-1, 1)         # (S, 1)

    vmem = pl.BlockSpec(memory_space=pltpu.MemorySpace.VMEM)
    feat, logits_pad = pl.pallas_call(
        ltr_kernel,
        out_shape=(jax.ShapeDtypeStruct((1, 5 * NUM_FILTERS), jnp.float32),
                   jax.ShapeDtypeStruct((1, NUM_CLASS_PAD), jnp.float32)),
        in_specs=[vmem] * 6,
        out_specs=(vmem, vmem),
    )(idx_col, params["emb_pad"], params["wcat"], params["bcat"],
      params["wfc_eff"], params["bfc_pad"])

    logits = logits_pad[:, :NUM_CLASS]

    # Mirrors torch `logits.argsort(-1)[-4:]` exactly: `[-4:]` slices the size-1 batch axis,
    # so this returns the full permutation (bug parity with the original module).
    # TODO(synk): argsort / top-k has no Pallas sort primitive; stays in plain JAX.
    top4 = jnp.argsort(logits, axis=-1)[-4:]
    return feat, logits, top4


learn_to_rank_forward_jit = jax.jit(learn_to_rank_forward)


def reference_forward(x_idx, params):
    """Pure-JAX mirror of the PyTorch forward (unpacked weights) for correctness checking."""
    x_emb = jnp.take(params["emb"], x_idx.reshape(-1), axis=0)
    hs = []
    for k in range(1, 6):
        L = SEQ - k + 1
        w = params[f"w{k}"]
        acc = jnp.zeros((L, NUM_FILTERS), jnp.float32)
        for i in range(k):
            acc = acc + x_emb[i:i + L] @ w[i * EMB_DIM:(i + 1) * EMB_DIM]
        acc = jnp.maximum(acc + params[f"b{k}"], 0.0)
        hs.append(jnp.max(acc, axis=0, keepdims=True))
    feat = jnp.concatenate([hs[0], hs[1], hs[2], hs[3], hs[3]], axis=1)   # h4 twice, h5 dead
    logits = feat @ params["wfc"] + params["bfc"]
    return feat, logits


if __name__ == "__main__":
    key = jax.random.PRNGKey(0)
    pkey, xkey = jax.random.split(key)
    params = init_params(pkey)
    x_idx = jax.random.randint(xkey, (1, SEQ), 0, VOCAB, dtype=jnp.int32)

    feat, logits, top4 = jax.block_until_ready(learn_to_rank_forward_jit(x_idx, params))

    ref_feat, ref_logits = reference_forward(x_idx, params)
    assert feat.shape == (1, 5 * NUM_FILTERS)
    assert logits.shape == (1, NUM_CLASS)
    assert top4.shape == (1, NUM_CLASS)   # [-4:] on a size-1 leading dim -> full argsort
    assert jnp.allclose(feat, ref_feat, atol=1e-4, rtol=1e-4)
    assert jnp.allclose(logits, ref_logits, atol=1e-4, rtol=1e-4)
    print("KERNEL_OK")
</pallas_src>

<mosaic_0001>
module attributes {stable_mosaic.version = 11 : i64} {
  func.func @ltr_kernel(%arg0: memref<12x1xi32, #tpu.memory_space<vmem>>, %arg1: memref<128x32xf32, #tpu.memory_space<vmem>>, %arg2: memref<32x320xf32, #tpu.memory_space<vmem>>, %arg3: memref<1x128xf32, #tpu.memory_space<vmem>>, %arg4: memref<128x640xf32, #tpu.memory_space<vmem>>, %arg5: memref<1x640xf32, #tpu.memory_space<vmem>>, %arg6: memref<1x160xf32, #tpu.memory_space<vmem>>, %arg7: memref<1x640xf32, #tpu.memory_space<vmem>>) attributes {dimension_semantics = [], scalar_prefetch = 0 : i64, scratch_operands = 0 : i64, tpu.core_type = #tpu.core_type<tc>} {
    %c0 = arith.constant 0 : index
    %c0_0 = arith.constant 0 : index
    %0 = vector.load %arg0[%c0, %c0_0] : memref<12x1xi32, #tpu.memory_space<vmem>>, vector<12x1xi32>
    %1 = tpu.iota {dimensions = array<i32: 1>} : vector<12x128xi32>
    %2 = vector.broadcast %0 : vector<12x1xi32> to vector<12x128xi32>
    %3 = arith.cmpi eq, %1, %2 : vector<12x128xi32>
    %4 = arith.extui %3 : vector<12x128xi1> to vector<12x128xi32>
    %5 = arith.sitofp %4 : vector<12x128xi32> to vector<12x128xf32>
    %c0_1 = arith.constant 0 : index
    %c0_2 = arith.constant 0 : index
    %6 = vector.load %arg1[%c0_1, %c0_2] : memref<128x32xf32, #tpu.memory_space<vmem>>, vector<128x32xf32>
    %cst = arith.constant dense<0.000000e+00> : vector<12x32xf32>
    %7 = tpu.matmul %5, %6, %cst {dimension_numbers = #tpu.dot_dimension_numbers<[1], [0], [0], [1], [0, 0, 1, 1], [], []>} : vector<12x128xf32>, vector<128x32xf32>, vector<12x32xf32> -> vector<12x32xf32>
    %c0_3 = arith.constant 0 : index
    %c0_4 = arith.constant 0 : index
    %8 = vector.load %arg2[%c0_3, %c0_4] : memref<32x320xf32, #tpu.memory_space<vmem>>, vector<32x320xf32>
    %cst_5 = arith.constant dense<0.000000e+00> : vector<12x320xf32>
    %9 = tpu.matmul %7, %8, %cst_5 {dimension_numbers = #tpu.dot_dimension_numbers<[1], [0], [0], [1], [0, 0, 1, 1], [], []>} : vector<12x32xf32>, vector<32x320xf32>, vector<12x320xf32> -> vector<12x320xf32>
    %c0_6 = arith.constant 0 : index
    %c0_7 = arith.constant 0 : index
    %10 = vector.load %arg3[%c0_6, %c0_7] : memref<1x128xf32, #tpu.memory_space<vmem>>, vector<1x128xf32>
    %11 = vector.extract_strided_slice %9 {offsets = [0, 0], sizes = [12, 32], strides = [1, 1]} : vector<12x320xf32> to vector<12x32xf32>
    %12 = vector.extract_strided_slice %10 {offsets = [0, 0], sizes = [1, 32], strides = [1, 1]} : vector<1x128xf32> to vector<1x32xf32>
    %13 = vector.broadcast %12 : vector<1x32xf32> to vector<12x32xf32>
    %14 = arith.addf %11, %13 : vector<12x32xf32>
    %cst_8 = arith.constant 0.000000e+00 : f32
    %15 = vector.broadcast %cst_8 : f32 to vector<12x32xf32>
    %16 = arith.maximumf %14, %15 : vector<12x32xf32>
    %cst_9 = arith.constant dense<0xFF800000> : vector<32xf32>
    %17 = vector.multi_reduction <maximumf>, %16, %cst_9 [0] : vector<12x32xf32> to vector<32xf32>
    %18 = vector.shape_cast %17 : vector<32xf32> to vector<1x32xf32>
    %19 = vector.extract_strided_slice %9 {offsets = [0, 32], sizes = [11, 32], strides = [1, 1]} : vector<12x320xf32> to vector<11x32xf32>
    %20 = vector.extract_strided_slice %9 {offsets = [1, 64], sizes = [11, 32], strides = [1, 1]} : vector<12x320xf32> to vector<11x32xf32>
    %21 = arith.addf %19, %20 : vector<11x32xf32>
    %22 = vector.extract_strided_slice %10 {offsets = [0, 32], sizes = [1, 32], strides = [1, 1]} : vector<1x128xf32> to vector<1x32xf32>
    %23 = vector.broadcast %22 : vector<1x32xf32> to vector<11x32xf32>
    %24 = arith.addf %21, %23 : vector<11x32xf32>
    %cst_10 = arith.constant 0.000000e+00 : f32
    %25 = vector.broadcast %cst_10 : f32 to vector<11x32xf32>
    %26 = arith.maximumf %24, %25 : vector<11x32xf32>
    %cst_11 = arith.constant dense<0xFF800000> : vector<32xf32>
    %27 = vector.multi_reduction <maximumf>, %26, %cst_11 [0] : vector<11x32xf32> to vector<32xf32>
    %28 = vector.shape_cast %27 : vector<32xf32> to vector<1x32xf32>
    %29 = vector.extract_strided_slice %9 {offsets = [0, 96], sizes = [10, 32], strides = [1, 1]} : vector<12x320xf32> to vector<10x32xf32>
    %30 = vector.extract_strided_slice %9 {offsets = [1, 128], sizes = [10, 32], strides = [1, 1]} : vector<12x320xf32> to vector<10x32xf32>
    %31 = arith.addf %29, %30 : vector<10x32xf32>
    %32 = vector.extract_strided_slice %9 {offsets = [2, 160], sizes = [10, 32], strides = [1, 1]} : vector<12x320xf32> to vector<10x32xf32>
    %33 = arith.addf %31, %32 : vector<10x32xf32>
    %34 = vector.extract_strided_slice %10 {offsets = [0, 64], sizes = [1, 32], strides = [1, 1]} : vector<1x128xf32> to vector<1x32xf32>
    %35 = vector.broadcast %34 : vector<1x32xf32> to vector<10x32xf32>
    %36 = arith.addf %33, %35 : vector<10x32xf32>
    %cst_12 = arith.constant 0.000000e+00 : f32
    %37 = vector.broadcast %cst_12 : f32 to vector<10x32xf32>
    %38 = arith.maximumf %36, %37 : vector<10x32xf32>
    %cst_13 = arith.constant dense<0xFF800000> : vector<32xf32>
    %39 = vector.multi_reduction <maximumf>, %38, %cst_13 [0] : vector<10x32xf32> to vector<32xf32>
    %40 = vector.shape_cast %39 : vector<32xf32> to vector<1x32xf32>
    %41 = vector.extract_strided_slice %9 {offsets = [0, 192], sizes = [9, 32], strides = [1, 1]} : vector<12x320xf32> to vector<9x32xf32>
    %42 = vector.extract_strided_slice %9 {offsets = [1, 224], sizes = [9, 32], strides = [1, 1]} : vector<12x320xf32> to vector<9x32xf32>
    %43 = arith.addf %41, %42 : vector<9x32xf32>
    %44 = vector.extract_strided_slice %9 {offsets = [2, 256], sizes = [9, 32], strides = [1, 1]} : vector<12x320xf32> to vector<9x32xf32>
    %45 = arith.addf %43, %44 : vector<9x32xf32>
    %46 = vector.extract_strided_slice %9 {offsets = [3, 288], sizes = [9, 32], strides = [1, 1]} : vector<12x320xf32> to vector<9x32xf32>
    %47 = arith.addf %45, %46 : vector<9x32xf32>
    %48 = vector.extract_strided_slice %10 {offsets = [0, 96], sizes = [1, 32], strides = [1, 1]} : vector<1x128xf32> to vector<1x32xf32>
    %49 = vector.broadcast %48 : vector<1x32xf32> to vector<9x32xf32>
    %50 = arith.addf %47, %49 : vector<9x32xf32>
    %cst_14 = arith.constant 0.000000e+00 : f32
    %51 = vector.broadcast %cst_14 : f32 to vector<9x32xf32>
    %52 = arith.maximumf %50, %51 : vector<9x32xf32>
    %cst_15 = arith.constant dense<0xFF800000> : vector<32xf32>
    %53 = vector.multi_reduction <maximumf>, %52, %cst_15 [0] : vector<9x32xf32> to vector<32xf32>
    %54 = vector.shape_cast %53 : vector<32xf32> to vector<1x32xf32>
    %55 = tpu.concatenate %18, %28, %40, %54 in 1 : vector<1x32xf32>, vector<1x32xf32>, vector<1x32xf32>, vector<1x32xf32> -> vector<1x128xf32>
    %56 = tpu.concatenate %55, %54 in 1 : vector<1x128xf32>, vector<1x32xf32> -> vector<1x160xf32>
    %c0_16 = arith.constant 0 : index
    %c0_17 = arith.constant 0 : index
    %57 = vector.load %arg6[%c0_16, %c0_17] : memref<1x160xf32, #tpu.memory_space<vmem>>, vector<1x160xf32>
    tpu.vector_store %arg6[%c0_16, %c0_17], %56 {strides = array<i32>} : memref<1x160xf32, #tpu.memory_space<vmem>>, vector<1x160xf32>,
    %c0_18 = arith.constant 0 : index
    %c0_19 = arith.constant 0 : index
    %58 = vector.load %arg4[%c0_18, %c0_19] : memref<128x640xf32, #tpu.memory_space<vmem>>, vector<128x640xf32>
    %cst_20 = arith.constant dense<0.000000e+00> : vector<1x640xf32>
    %59 = tpu.matmul %55, %58, %cst_20 {dimension_numbers = #tpu.dot_dimension_numbers<[1], [0], [0], [1], [0, 0, 1, 1], [], []>} : vector<1x128xf32>, vector<128x640xf32>, vector<1x640xf32> -> vector<1x640xf32>
    %c0_21 = arith.constant 0 : index
    %c0_22 = arith.constant 0 : index
    %60 = vector.load %arg5[%c0_21, %c0_22] : memref<1x640xf32, #tpu.memory_space<vmem>>, vector<1x640xf32>
    %61 = arith.addf %59, %60 : vector<1x640xf32>
    %c0_23 = arith.constant 0 : index
    %c0_24 = arith.constant 0 : index
    %62 = vector.load %arg7[%c0_23, %c0_24] : memref<1x640xf32, #tpu.memory_space<vmem>>, vector<1x640xf32>
    tpu.vector_store %arg7[%c0_23, %c0_24], %61 {strides = array<i32>} : memref<1x640xf32, #tpu.memory_space<vmem>>, vector<1x640xf32>,
    return
  }
}

</mosaic_0001>

<bundles_post_ra>
// kernel: learn_to_rank_forward.1
= control target key start
LH: loop header
LB: loop body
LE: loop exit
PB: predicated region body
PF: predicated region fallthrough
CT: control target
= control target key end

     0   :  { %13 = vsyncpa [#allocation3], 0  ;;  %s1321_s0 = inlined_call_operand.vmem [shape: s32[12,1], index: 0, kind: input, shape index: {}]   ;;  %s1322_s1 = inlined_call_operand.vmem [shape: f32[128,32], index: 1, kind: input, shape index: {}]   ;;  %s1323_s2 = inlined_call_operand.vmem [shape: f32[32,320], index: 2, kind: input, shape index: {}]   ;;  %s1324_s3 = inlined_call_operand.vmem [shape: f32[1,128], index: 3, kind: input, shape index: {}]   ;;  %s1325_s4 = inlined_call_operand.hbm [shape: f32[128,640], index: 4, kind: input, shape index: {}]   ;;  %s1326_s5 = inlined_call_operand.vmem [shape: f32[1,640], index: 5, kind: input, shape index: {}]   ;;  %s1327_s6 = inlined_call_operand.hbm [shape: f32[1,160], index: 6, kind: output, shape index: {0}]   ;;  %s1328_s7 = inlined_call_operand.vmem [shape: f32[1,640], index: 7, kind: output, shape index: {1}]  }
   0x1   :  { %14 = vsyncpa [#allocation4], 0  ;;  %s1067_s24 = smov [#allocation2]  }
   0x2   :  { %s28_s25 = sshll.u32 %s1067_s24, 4  ;;  %s29_s25 = int_to_ptr.vmem [resolvable:$true] %s28_s25 }
   0x3   :  { %s1031_s26 = scalar_lea.vmem %s29_s25, 10240  ;;  %p1036_p1 = scmp.lt.s32.totalorder %s29_s25, %s29_s25 }
   0x4   :  { %p1032_p0 = scmp.ne.s32.totalorder %s29_s25, %s1031_s26  ;;  %p1037_p2 = scmp.lt.s32.totalorder %s1031_s26, %s1031_s26 }
   0x6   :  { %p1038_p3 = por %p1037_p2, %p1036_p1 }
   0x8   :  { %p1039_p4 = pnand %p1038_p3, %p1032_p0 }
   0xa   :  { %1042 = shalt.err (!%p1039_p4)
}
   0xb   :  { %s1068_s27 = smov 640   ;;  %s1069_s28 = smov 40  }
   0xc   :  { %34 = dma.hbm_to_vmem [thread:$0]  %s1325_s4, 10240, %s29_s25, [#allocation3], %s1068_s27, %s1068_s27, %s1069_s28  }
   0xd   :  { %1063 = dma.done.wait [#allocation3], 10240  }
   0xe   :  { %1064 = vsyncadd [#allocation3], 4294957056  ;;  %v1070_v0 = vmov 0   ;;  %v40_v1 = vld [vmem:[%s1321_s0] sm:$0xff]  ;;  %v71_v2 = vld [vmem:[%s1322_s1 + $0x78] sm:$0xff]  ;;  %v42_v22 = vlaneseq  ;;  %v1071_v25 = vmov 1.0  }
   0xf   :  { %1022 = vset.pattern.permute.xlu0 %v1070_v0  ;;  %929 = vmatprep.subr.mxu0 %v71_v2  ;;  %v70_v3 = vld [vmem:[%s1322_s1 + $0x70] sm:$0xff]  ;;  %v41_v4 = vld [vmem:[%s1321_s0 + $0x8] sm:$0xf]  ;;  %v68_v6 = vld [vmem:[%s1322_s1 + $0x60] sm:$0xff]  ;;  %v1072_v36 = vmov 0.0   ;;  %vm159_vm2 = vcmask 261120  }
  0x10   :  { %45 = vperm.xlu0 %1022, %v40_v1   ;;  %930 = vmatpush3.msra.mxu0 %v71_v2  ;;  %v69_v5 = vld [vmem:[%s1322_s1 + $0x68] sm:$0xff]  ;;  %v67_v7 = vld [vmem:[%s1322_s1 + $0x58] sm:$0xff]  ;;  %v155_v9 = vld [vmem:[%s1323_s2 + $0x40] sm:$0xff]  ;;  %v43_v23 = vand.u32 127, %v42_v22  ;;  %vm381_vm3 = vcmask 1045504   ;;  %vm426_vm4 = vcmask 1044480  }
  0x11   :  { %931 = vmatprep.subr.mxu0 %v70_v3  ;;  %v158_v8 = vld [vmem:[%s1323_s2 + $0x58] sm:$0xff]  ;;  %v66_v10 = vld [vmem:[%s1322_s1 + $0x50] sm:$0xff]  ;;  %v65_v11 = vld [vmem:[%s1322_s1 + $0x48] sm:$0xff]  ;;  %s1074_s16 = smov 96   ;;  %s1075_s17 = smov 32   ;;  %vm341_vm5 = vcmask 1046528  }
  0x12   :  { %932 = vmatpush3.msra.mxu0 %v70_v3  ;;  %964 = vmatprep.subr.mxu1 %v158_v8  ;;  %v64_v12 = vld [vmem:[%s1322_s1 + $0x40] sm:$0xff]  ;;  %v63_v13 = vld [vmem:[%s1322_s1 + $0x38] sm:$0xff]  ;;  %v62_v14 = vld [vmem:[%s1322_s1 + $0x30] sm:$0xff]  ;;  %vm400_vm6 = vcmask 1048320   ;;  %vm402_vm7 = vcmask 1042176   ;;  %vm445_vm8 = vcmask 785920  }
  0x13   :  { %933 = vmatprep.subr.mxu0 %v69_v5  ;;  %965 = vmatpush3.msra.mxu1 %v158_v8  ;;  %v61_v15 = vld [vmem:[%s1322_s1 + $0x28] sm:$0xff]  ;;  %v60_v16 = vld [vmem:[%s1322_s1 + $0x20] sm:$0xff]  ;;  %v59_v17 = vld [vmem:[%s1322_s1 + $0x18] sm:$0xff]  ;;  %vm447_vm9 = vcmask 778752   ;;  %vm359_vm10 = vcmask 518400   ;;  %vm330_vm11 = vcmask 257024  }
  0x14   :  { %48 = vperm.xlu0 %1022, %v41_v4   ;;  %934 = vmatpush3.msra.mxu0 %v69_v5  ;;  %v58_v18 = vld [vmem:[%s1322_s1 + $0x10] sm:$0xff]  ;;  %v57_v19 = vld [vmem:[%s1322_s1 + $0x8] sm:$0xff]  ;;  %v56_v20 = vld [vmem:[%s1322_s1] sm:$0xff]  ;;  %vm357_vm12 = vcmask 523520   ;;  %vm465_vm13 = vcmask 523264   ;;  %vm467_vm14 = vcmask 785408  }
  0x15   :  { %935 = vmatprep.subr.mxu0 %v68_v6  ;;  %966 = vmatprep.subr.mxu1 %v155_v9  ;;  %v157_v21 = vld [vmem:[%s1323_s2 + $0x50] sm:$0xff]  ;;  %v156_v27 = vld [vmem:[%s1323_s2 + $0x48] sm:$0xff]  ;;  %v154_v28 = vld [vmem:[%s1323_s2 + $0x38] sm:$0xff]  ;;  %vm1077_vm15 = vmmov 0  }
  0x16   :  { %936 = vmatpush3.msra.mxu0 %v68_v6  ;;  %967 = vmatpush3.msra.mxu1 %v155_v9  ;;  %v153_v29 = vld [vmem:[%s1323_s2 + $0x30] sm:$0xff]  ;;  %v151_v30 = vld [vmem:[%s1323_s2 + $0x20] sm:$0xff]  ;;  %v150_v31 = vld [vmem:[%s1323_s2 + $0x18] sm:$0xff] }
  0x17   :  { %937 = vmatprep.subr.mxu0 %v67_v7  ;;  %v152_v32 = vld [vmem:[%s1323_s2 + $0x28] sm:$0xff]  ;;  %v147_v34 = vld [vmem:[%s1323_s2] sm:$0xff]  ;;  %v149_v35 = vld [vmem:[%s1323_s2 + $0x10] sm:$0xff] }
  0x18   :  { %938 = vmatpush3.msra.mxu0 %v67_v7  ;;  %968 = vmatprep.subr.mxu1 %v152_v32  ;;  %v148_v33 = vld [vmem:[%s1323_s2 + $0x8] sm:$0xff]  ;;  %s1073_s2 = smov 64   ;;  %v1245_v57 = vld [vmem:[%s1324_s3] ss:$0 sm:$0xff]  ;;  %v568_v62 = vld [vmem:[#allocation2 + $0x258] sm:$0xff]  ;;  %s1078_s3 = smov [#allocation5]  }
  0x19   :  { %939 = vmatprep.subr.mxu0 %v66_v10  ;;  %969 = vmatpush3.msra.mxu1 %v152_v32  ;;  %v569_v61 = vld [vmem:[#allocation2 + $0x260] sm:$0xff]  ;;  %v571_v63 = vld [vmem:[#allocation2 + $0x270] sm:$0xff]  ;;  %v564_v0 = vld [vmem:[#allocation2 + $0x238] sm:$0xff]  ;;  %s866_s20 = sshll.u32 %s1078_s3, 4  ;;  %s867_s20 = int_to_ptr.vmem [resolvable:$true] %s866_s20 }
  0x1a   :  { %940 = vmatpush3.msra.mxu0 %v66_v10  ;;  %970 = vmatprep.subr.mxu1 %v149_v35  ;;  %v570_v1 = vld [vmem:[#allocation2 + $0x268] sm:$0xff]  ;;  %v563_v2 = vld [vmem:[#allocation2 + $0x230] sm:$0xff]  ;;  %v565_v5 = vld [vmem:[#allocation2 + $0x240] sm:$0xff]  ;;  %s1043_s21 = scalar_lea.vmem %s867_s20, 32  ;;  %p1048_p6 = scmp.lt.s32.totalorder %s867_s20, %s867_s20 }
  0x1b   :  { %941 = vmatprep.subr.mxu0 %v65_v11  ;;  %971 = vmatpush3.msra.mxu1 %v149_v35  ;;  %v566_v3 = vld [vmem:[#allocation2 + $0x248] sm:$0xff]  ;;  %v559_v4 = vld [vmem:[#allocation2 + $0x210] sm:$0xff]  ;;  %v561_v7 = vld [vmem:[#allocation2 + $0x220] sm:$0xff]  ;;  %p1044_p5 = scmp.ne.s32.totalorder %s867_s20, %s1043_s21  ;;  %p1049_p7 = scmp.lt.s32.totalorder %s1043_s21, %s1043_s21 }
  0x1c   :  { %942 = vmatpush3.msra.mxu0 %v65_v11  ;;  %600 = vmatprep.subr.mxu1 %v569_v61  ;;  %v558_v6 = vld [vmem:[#allocation2 + $0x208] sm:$0xff]  ;;  %v560_v9 = vld [vmem:[#allocation2 + $0x218] sm:$0xff]  ;;  %v553_v11 = vld [vmem:[#allocation2 + $0x1e0] sm:$0xff] }
  0x1d   :  { %943 = vmatprep.subr.mxu0 %v64_v12  ;;  %v554_v8 = vld [vmem:[#allocation2 + $0x1e8] sm:$0xff]  ;;  %v556_v10 = vld [vmem:[#allocation2 + $0x1f8] sm:$0xff]  ;;  %p1050_p8 = por %p1049_p7, %p1048_p6 }
  0x1e   :  { %944 = vmatpush3.msra.mxu0 %v64_v12  ;;  %v555_v12 = vld [vmem:[#allocation2 + $0x1f0] sm:$0xff]  ;;  %v528_v32 = vld [vmem:[#allocation2 + $0x118] sm:$0xff]  ;;  %v526_v35 = vld [vmem:[#allocation2 + $0x108] sm:$0xff] }
  0x1f   :  { %945 = vmatprep.subr.mxu0 %v63_v13  ;;  %p1051_p9 = pnand %p1050_p8, %p1044_p5 }
  0x20   :  { %946 = vmatpush3.msra.mxu0 %v63_v13  ;;  %v549_v13 = vld [vmem:[#allocation2 + $0x1c0] sm:$0xff] }
  0x21   :  { %947 = vmatprep.subr.mxu0 %v62_v14 }
  0x22   :  { %948 = vmatpush3.msra.mxu0 %v62_v14  ;;  %v551_v14 = vld [vmem:[#allocation2 + $0x1d0] sm:$0xff] }
  0x23   :  { %949 = vmatprep.subr.mxu0 %v61_v15 }
  0x24   :  { %950 = vmatpush3.msra.mxu0 %v61_v15  ;;  %v548_v15 = vld [vmem:[#allocation2 + $0x1b8] sm:$0xff] }
  0x25   :  { %951 = vmatprep.subr.mxu0 %v60_v16 }
  0x26   :  { %952 = vmatpush3.msra.mxu0 %v60_v16  ;;  %v550_v16 = vld [vmem:[#allocation2 + $0x1c8] sm:$0xff] }
  0x27   :  { %953 = vmatprep.subr.mxu0 %v59_v17 }
  0x28   :  { %954 = vmatpush3.msra.mxu0 %v59_v17  ;;  %v544_v17 = vld [vmem:[#allocation2 + $0x198] sm:$0xff] }
  0x29   :  { %955 = vmatprep.subr.mxu0 %v58_v18 }
  0x2a   :  { %956 = vmatpush3.msra.mxu0 %v58_v18  ;;  %v546_v18 = vld [vmem:[#allocation2 + $0x1a8] sm:$0xff] }
  0x2b   :  { %957 = vmatprep.subr.mxu0 %v57_v19 }
  0x2c   :  { %958 = vmatpush3.msra.mxu0 %v57_v19  ;;  %v543_v19 = vld [vmem:[#allocation2 + $0x190] sm:$0xff] }
  0x2d   :  { %959 = vmatprep.subr.mxu0 %v56_v20 }
  0x2e   :  { %960 = vmatpush3.msra.mxu0 %v56_v20  ;;  %v545_v20 = vld [vmem:[#allocation2 + $0x1a0] sm:$0xff] }
  0x2f   :  { %190 = vmatprep.subr.mxu0 %v157_v21  ;;  %v539_v21 = vld [vmem:[#allocation2 + $0x170] sm:$0xff] }
  0x8b   :  { %v46_v24 = vpop.permute.xlu0 %45 }
  0x8c   :  { %vm50_vm0 = vcmp.eq.s32.totalorder %v43_v23, %v46_v24  ;;  %v538_v24 = vld [vmem:[#allocation2 + $0x168] sm:$0xff] }
  0x8d   :  { %961 = vmatprep.mubr.msk.f32.mxu0 %vm50_vm0, %v1071_v25  ;;  %vm490_vm0 = vcmp.lt.s32.totalorder %v42_v22, 160 }
  0x8f   :  { %v49_v26 = vpop.permute.xlu0 %48 }
  0x90   :  { %vm51_vm1 = vcmp.eq.s32.totalorder %v43_v23, %v49_v26  ;;  %v541_v23 = vld [vmem:[#allocation2 + $0x180] sm:$0xff]  ;;  %v534_v26 = vld [vmem:[#allocation2 + $0x148] sm:$0xff] }
  0x91   :  { %962 = vmatmul.mubr.msk.f32.vlgmr.msra.gmra.mxu0 %vm51_vm1, %v1071_v25  ;;  %v540_v25 = vld [vmem:[#allocation2 + $0x178] sm:$0xff] }
  0x92   :  { %191 = vmatpush1.msra.mxu0 %v156_v27  ;;  %230 = vmatprep.mubr.f32.mxu0 %v1072_v36  ;;  %v536_v27 = vld [vmem:[#allocation2 + $0x158] sm:$0xff] }
  0x93   :  { %192 = vmatprep.subr.mxu0 %v154_v28  ;;  %v533_v28 = vld [vmem:[#allocation2 + $0x140] sm:$0xff] }
  0x94   :  { %193 = vmatpush1.msra.mxu0 %v153_v29  ;;  %v535_v29 = vld [vmem:[#allocation2 + $0x150] sm:$0xff] }
  0x95   :  { %194 = vmatprep.subr.mxu0 %v151_v30  ;;  %v529_v30 = vld [vmem:[#allocation2 + $0x120] sm:$0xff] }
  0x96   :  { %195 = vmatpush1.msra.mxu0 %v150_v31  ;;  %v531_v31 = vld [vmem:[#allocation2 + $0x130] sm:$0xff] }
  0x97   :  { %196 = vmatprep.subr.mxu0 %v148_v33  ;;  %v530_v33 = vld [vmem:[#allocation2 + $0x128] sm:$0xff] }
  0x98   :  { %197 = vmatpush1.msra.mxu0 %v147_v34  ;;  %v524_v34 = vld [vmem:[#allocation2 + $0xf8] sm:$0xff] }
  0x99   :  { %671 = vmatprep.subr.mxu0 %v571_v63 }
 0x151   :  { %v963_v37 = vpop.f32.mrf.mxu0 }
 0x153   :  { %v138_v38 = vpop.f32.mrf.mxu0 }
 0x154   :  { %883 = vmatmul.mubr.msk.f32.vlgmr.msra.gmra.mxu0 %vm159_vm2, %v138_v38  ;;  %972 = vmatprep.mubr.msk.f32.mxu1 %vm159_vm2, %v138_v38  ;;  %v525_v38 = vld [vmem:[#allocation2 + $0x100] sm:$0xff] }
 0x155   :  { %973 = vmatmul.mubr.msk.f32.vlgmr.msra.gmra.mxu1 %vm159_vm2, %v963_v37  ;;  %236 = vmatprep.mubr.f32.mxu0 %v1072_v36 }
 0x156   :  { %664 = vmatprep.mubr.f32.mxu1 %v1072_v36  ;;  %601 = vmatpush1.msra.mxu1 %v568_v62 }
 0x157   :  { %672 = vmatpush1.msra.mxu0 %v570_v1  ;;  %602 = vmatprep.subr.mxu1 %v564_v0 }
 0x158   :  { %884 = vmatmul.mubr.msk.f32.gmra.mxu0 %vm159_vm2, %v963_v37  ;;  %673 = vmatprep.subr.mxu0 %v566_v3  ;;  %v523_v37 = vld [vmem:[#allocation2 + $0xf0] sm:$0xff] }
 0x159   :  { %735 = vmatprep.mubr.f32.mxu0 %v1072_v36  ;;  %603 = vmatpush1.msra.mxu1 %v563_v2 }
 0x15a   :  { %674 = vmatpush1.msra.mxu0 %v565_v5  ;;  %604 = vmatprep.subr.mxu1 %v559_v4 }
 0x15b   :  { %675 = vmatprep.subr.mxu0 %v561_v7  ;;  %605 = vmatpush1.msra.mxu1 %v558_v6 }
 0x15c   :  { %676 = vmatpush1.msra.mxu0 %v560_v9  ;;  %606 = vmatprep.subr.mxu1 %v554_v8 }
 0x15d   :  { %677 = vmatprep.subr.mxu0 %v556_v10  ;;  %607 = vmatpush1.msra.mxu1 %v553_v11 }
 0x15e   :  { %678 = vmatpush1.msra.mxu0 %v555_v12  ;;  %608 = vmatprep.subr.mxu1 %v549_v13 }
 0x15f   :  { %679 = vmatprep.subr.mxu0 %v551_v14  ;;  %609 = vmatpush1.msra.mxu1 %v548_v15 }
 0x160   :  { %680 = vmatpush1.msra.mxu0 %v550_v16  ;;  %610 = vmatprep.subr.mxu1 %v544_v17 }
 0x161   :  { %681 = vmatprep.subr.mxu0 %v546_v18  ;;  %611 = vmatpush1.msra.mxu1 %v543_v19 }
 0x162   :  { %682 = vmatpush1.msra.mxu0 %v545_v20  ;;  %612 = vmatprep.subr.mxu1 %v539_v21 }
 0x163   :  { %683 = vmatprep.subr.mxu0 %v541_v23  ;;  %613 = vmatpush1.msra.mxu1 %v538_v24  ;;  %v505_v24 = vld [vmem:[#allocation2 + $0x60] sm:$0xff] }
 0x164   :  { %684 = vmatpush1.msra.mxu0 %v540_v25  ;;  %614 = vmatprep.subr.mxu1 %v534_v26 }
 0x165   :  { %685 = vmatprep.subr.mxu0 %v536_v27  ;;  %615 = vmatpush1.msra.mxu1 %v533_v28  ;;  %v498_v27 = vld [vmem:[#allocation2 + $0x28] sm:$0xff]  ;;  %v501_v28 = vld [vmem:[#allocation2 + $0x40] sm:$0xff] }
 0x166   :  { %686 = vmatpush1.msra.mxu0 %v535_v29  ;;  %616 = vmatprep.subr.mxu1 %v529_v30  ;;  %v494_v29 = vld [vmem:[#allocation2 + $0x8] sm:$0xff] }
 0x167   :  { %687 = vmatprep.subr.mxu0 %v531_v31  ;;  %617 = vmatpush1.msra.mxu1 %v528_v32  ;;  %v500_v31 = vld [vmem:[#allocation2 + $0x38] sm:$0xff]  ;;  %v493_v32 = vld [vmem:[#allocation2] sm:$0xff] }
 0x168   :  { %688 = vmatpush1.msra.mxu0 %v530_v33  ;;  %618 = vmatprep.subr.mxu1 %v524_v34  ;;  %v496_v33 = vld [vmem:[#allocation2 + $0x18] sm:$0xff] }
 0x169   :  { %689 = vmatprep.subr.mxu0 %v526_v35  ;;  %619 = vmatpush1.msra.mxu1 %v523_v37 }
 0x16a   :  { %690 = vmatpush1.msra.mxu0 %v525_v38 }
 0x214   :  { %v1221_v39 = vpop.f32.mrf.mxu0 }
 0x215   :  { %v974_v40 = vpop.f32.mrf.mxu1  ;;  %v342_v59 = vrot.slane %v1221_v39, 1 }
 0x216   :  { %v1223_v41 = vpop.f32.mrf.mxu0  ;;  %v416_v42 = vrot.slane %v974_v40, 2  ;;  %v428_v50 = vrot.slane %v974_v40, 3  ;;  %v519_v40 = vld [vmem:[#allocation2 + $0xd0] sm:$0xff] }
 0x217   :  { %v309_v43 = vpop.f32.mrf.mxu1  ;;  %v382_v53 = vrot.slane %v1223_v41, 2  ;;  %v370_v54 = vrot.slane %v1223_v41, 1  ;;  %620 = vmatprep.subr.mxu1 %v519_v40  ;;  %v495_v40 = vld [vmem:[#allocation2 + $0x10] sm:$0xff] }
 0x218   :  { %v415_v44 = vrot.slane %v309_v43, 2  ;;  %420 = vrot.lane.b32.xlu1 %v416_v42, %s1073_s2  ;;  %v1226_v45 = vpop.f32.mrf.mxu0  ;;  %v427_v46 = vrot.slane %v309_v43, 3  ;;  %v518_v43 = vld [vmem:[#allocation2 + $0xc8] sm:$0xff] }
 0x219   :  { %v343_v58 = vrot.slane %v1226_v45, 1  ;;  %621 = vmatpush1.msra.mxu1 %v518_v43 }
 0x21a   :  { %v1228_v47 = vpop.f32.mrf.mxu0  ;;  %v417_v48 = vsel %vm381_vm3, %v415_v44, %v416_v42  ;;  %v429_v52 = vsel %vm426_vm4, %v427_v46, %v428_v50  ;;  %v521_v42 = vld [vmem:[#allocation2 + $0xe0] sm:$0xff]  ;;  %v520_v44 = vld [vmem:[#allocation2 + $0xd8] sm:$0xff]  ;;  %v514_v46 = vld [vmem:[#allocation2 + $0xa8] sm:$0xff] }
 0x21b   :  { %v371_v49 = vrot.slane %v1228_v47, 1  ;;  %418 = vrot.lane.b32.xlu0 %v417_v48, %s1073_s2  ;;  %v383_v51 = vrot.slane %v1228_v47, 2  ;;  %v344_v60 = vsel %vm341_vm5, %v342_v59, %v343_v58  ;;  %v516_v48 = vld [vmem:[#allocation2 + $0xb8] sm:$0xff]  ;;  %691 = vmatprep.subr.mxu0 %v521_v42 }
 0x21c   :  { %692 = vmatpush1.msra.mxu0 %v520_v44  ;;  %622 = vmatprep.subr.mxu1 %v514_v46 }
 0x21d   :  { %375 = vrot.lane.b32.xlu1 %v371_v49, %s1074_s16  ;;  %v384_v55 = vsel %vm381_vm3, %v382_v53, %v383_v51  ;;  %v372_v56 = vsel %vm341_vm5, %v370_v54, %v371_v49  ;;  %v513_v49 = vld [vmem:[#allocation2 + $0xa0] sm:$0xff]  ;;  %693 = vmatprep.subr.mxu0 %v516_v48  ;;  %v508_v53 = vld [vmem:[#allocation2 + $0x78] sm:$0xff]  ;;  %v510_v54 = vld [vmem:[#allocation2 + $0x88] sm:$0xff] }
 0x21e   :  { %623 = vmatpush1.msra.mxu1 %v513_v49 }
 0x21f   :  { %430 = vrot.lane.b32.xlu0 %v429_v52, %s1075_s17  ;;  %v511_v52 = vld [vmem:[#allocation2 + $0x90] sm:$0xff] }
 0x221   :  { %387 = vrot.lane.b32.xlu1 %v383_v51, %s1073_s2  ;;  %v509_v51 = vld [vmem:[#allocation2 + $0x80] sm:$0xff] }
 0x222   :  { %624 = vmatprep.subr.mxu1 %v509_v51 }
 0x223   :  { %385 = vrot.lane.b32.xlu0 %v384_v55, %s1073_s2  ;;  %v504_v55 = vld [vmem:[#allocation2 + $0x58] sm:$0xff]  ;;  %625 = vmatpush1.msra.mxu1 %v508_v53 }
 0x224   :  { %626 = vmatprep.subr.mxu1 %v504_v55 }
 0x225   :  { %373 = vrot.lane.b32.xlu1 %v372_v56, %s1074_s16  ;;  %v506_v56 = vld [vmem:[#allocation2 + $0x68] sm:$0xff] }
 0x227   :  { %393 = vrot.lane.b32.xlu0 %v1245_v57, %s1075_s17 }
 0x229   :  { %432 = vrot.lane.b32.xlu1 %v428_v50, %s1075_s17  ;;  %v515_v50 = vld [vmem:[#allocation2 + $0xb0] sm:$0xff] }
 0x22a   :  { %694 = vmatpush1.msra.mxu0 %v515_v50 }
 0x22b   :  { %345 = vrot.lane.b32.xlu0 %v344_v60, %s1074_s16  ;;  %695 = vmatprep.subr.mxu0 %v511_v52 }
 0x22c   :  { %696 = vmatpush1.msra.mxu0 %v510_v54 }
 0x22d   :  { %438 = vrot.lane.b32.xlu1 %v1245_v57, %s1074_s16  ;;  %697 = vmatprep.subr.mxu0 %v506_v56 }
 0x22e   :  { %698 = vmatpush1.msra.mxu0 %v505_v24 }
 0x22f   :  { %699 = vmatprep.subr.mxu0 %v501_v28 }
 0x230   :  { %700 = vmatpush1.msra.mxu0 %v500_v31 }
 0x231   :  { %347 = vrot.lane.b32.xlu1 %v343_v58, %s1074_s16  ;;  %v503_v58 = vld [vmem:[#allocation2 + $0x50] sm:$0xff]  ;;  %701 = vmatprep.subr.mxu0 %v496_v33  ;;  %v557_v33 = vld [vmem:[#allocation2 + $0x200] sm:$0xff] }
 0x232   :  { %627 = vmatpush1.msra.mxu1 %v503_v58  ;;  %702 = vmatpush1.msra.mxu0 %v495_v40  ;;  %v537_v40 = vld [vmem:[#allocation2 + $0x160] sm:$0xff] }
 0x28a   :  { %v421_v59 = vpop.permute.xlu1 %420 }
 0x28d   :  { %v419_v60 = vpop.permute.xlu0 %418 }
 0x28f   :  { %v376_v61 = vpop.permute.xlu1 %375 }
 0x290   :  { %v380_v1 = vadd.f32 %v376_v61, %v1226_v45  ;;  %v412_v3 = vadd.f32 %v376_v61, %v1228_v47 }
 0x291   :  { %v431_v62 = vpop.permute.xlu0 %430 }
 0x292   :  { %v425_v14 = vadd.f32 %v421_v59, %v412_v3 }
 0x293   :  { %v388_v63 = vpop.permute.xlu1 %387 }
 0x294   :  { %v392_v4 = vadd.f32 %v388_v63, %v380_v1 }
 0x295   :  { %v386_v0 = vpop.permute.xlu0 %385 }
 0x297   :  { %v374_v2 = vpop.permute.xlu1 %373 }
 0x298   :  { %v379_v5 = vadd.f32 %v374_v2, %v1221_v39  ;;  %v411_v6 = vadd.f32 %v374_v2, %v1223_v41  ;;  %v499_v41 = vld [vmem:[#allocation2 + $0x30] sm:$0xff] }
 0x299   :  { %v394_v7 = vpop.permute.xlu0 %393  ;;  %628 = vmatprep.subr.mxu1 %v499_v41 }
 0x29a   :  { %v424_v8 = vadd.f32 %v419_v60, %v411_v6  ;;  %v391_v9 = vadd.f32 %v386_v0, %v379_v5  ;;  %v397_v10 = vadd.f32 %v394_v7, %v392_v4  ;;  %629 = vmatpush1.msra.mxu1 %v498_v27  ;;  %v326_v60 = vadd.f32 %v1245_v57, %v1226_v45  ;;  %v572_v27 = vld [vmem:[#allocation2 + $0x278] sm:$0xff] }
 0x29b   :  { %v433_v11 = vpop.permute.xlu1 %432  ;;  %630 = vmatprep.subr.mxu1 %v494_v29 }
 0x29c   :  { %v396_v12 = vadd.f32 %v394_v7, %v391_v9  ;;  %v399_v13 = vmax.f32 %v397_v10, 0.0  ;;  %v437_v16 = vadd.f32 %v433_v11, %v425_v14  ;;  %v436_v17 = vadd.f32 %v431_v62, %v424_v8  ;;  %631 = vmatpush1.msra.mxu1 %v493_v32  ;;  %v562_v32 = vld [vmem:[#allocation2 + $0x228] sm:$0xff] }
 0x29d   :  { %975 = vmatprep.subr.mxu1 %v1072_v36  ;;  %v346_v55 = vpop.permute.xlu0 %345  ;;  %v325_v62 = vadd.f32 %v1245_v57, %v1221_v39  ;;  %v328_v0 = vmax.f32 %v326_v60, 0.0 }
 0x29e   :  { %v398_v15 = vmax.f32 %v396_v12, 0.0  ;;  %v403_v19 = vsel %vm402_vm7, %v399_v13, -inf  ;;  %v351_v58 = vadd.f32 %v346_v55, %v1221_v39 }
 0x29f   :  { %v439_v18 = vpop.permute.xlu1 %438  ;;  %v327_v2 = vmax.f32 %v325_v62, 0.0  ;;  %v331_v4 = vsel %vm330_vm11, %v328_v0, -inf }
 0x2a0   :  { %v401_v47 = vsel %vm400_vm6, %v398_v15, -inf  ;;  %v441_v20 = vadd.f32 %v439_v18, %v436_v17  ;;  %v442_v21 = vadd.f32 %v439_v18, %v437_v16  ;;  %v353_v61 = vadd.f32 %v1245_v57, %v351_v58 }
 0x2a1   :  { %v404_v23 = vmax.f32 %v401_v47, %v403_v19  ;;  %v329_v7 = vsel %vm159_vm2, %v327_v2, -inf  ;;  %v1076_v15 = vmov 1966171168   ;;  %v1276_v47 = vshrl.u32 %v42_v22, 7 }
 0x2a2   :  { %v443_v25 = vmax.f32 %v441_v20, 0.0  ;;  %v444_v26 = vmax.f32 %v442_v21, 0.0  ;;  %v355_v1 = vmax.f32 %v353_v61, 0.0  ;;  %v332_v8 = vmax.f32 %v329_v7, %v331_v4 }
 0x2a3   :  { %v405_v30 = vrot.slane %v404_v23, 4  ;;  %v348_v54 = vpop.permute.xlu1 %347  ;;  %v474_v16 = vunpack.c.l.s4 %v1076_v15 }
 0x2a4   :  { %v446_v34 = vsel %vm445_vm8, %v443_v25, -inf  ;;  %v448_v35 = vsel %vm447_vm9, %v444_v26, -inf  ;;  %v352_v56 = vadd.f32 %v348_v54, %v1226_v45  ;;  %v358_v5 = vsel %vm357_vm12, %v355_v1, -inf }
 0x2a5   :  { %v406_v37 = vmax.f32 %v404_v23, %v405_v30  ;;  %v449_v38 = vmax.f32 %v446_v34, %v448_v35  ;;  %v333_v9 = vrot.slane %v332_v8, 4  ;;  %v475_v20 = vunpack.c.0.s8 %v474_v16  ;;  %v567_v30 = vld [vmem:[#allocation2 + $0x250] sm:$0xff]  ;;  %v552_v35 = vld [vmem:[#allocation2 + $0x1d8] sm:$0xff] }
 0x2a6   :  { %v354_v59 = vadd.f32 %v1245_v57, %v352_v56 }
 0x2a7   :  { %v450_v42 = vrot.slane %v449_v38, 4  ;;  %v407_v43 = vrot.slane %v406_v37, 2  ;;  %v334_v11 = vmax.f32 %v332_v8, %v333_v9  ;;  %v1280_v25 = vsub.s32 %v475_v20, %v1276_v47 }
 0x2a8   :  { %v356_v63 = vmax.f32 %v354_v59, 0.0 }
 0x2a9   :  { %v451_v44 = vmax.f32 %v449_v38, %v450_v42  ;;  %v408_v46 = vmax.f32 %v406_v37, %v407_v43  ;;  %v335_v39 = vrot.slane %v334_v11, 2  ;;  %v547_v37 = vld [vmem:[#allocation2 + $0x1b0] sm:$0xff]  ;;  %v542_v38 = vld [vmem:[#allocation2 + $0x188] sm:$0xff]  ;;  %v532_v42 = vld [vmem:[#allocation2 + $0x138] sm:$0xff] }
 0x2aa   :  { %v360_v3 = vsel %vm359_vm10, %v356_v63, -inf  ;;  %v527_v43 = vld [vmem:[#allocation2 + $0x110] sm:$0xff] }
 0x2ab   :  { %v409_v48 = vrot.slane %v408_v46, 1  ;;  %v452_v49 = vrot.slane %v451_v44, 2  ;;  %v361_v6 = vmax.f32 %v358_v5, %v360_v3  ;;  %v336_v13 = vmax.f32 %v334_v11, %v335_v39 }
 0x2ad   :  { %v410_v50 = vmax.f32 %v408_v46, %v409_v48  ;;  %v453_v51 = vmax.f32 %v451_v44, %v452_v49  ;;  %v362_v45 = vrot.slane %v361_v6, 4  ;;  %v337_v17 = vrot.slane %v336_v13, 1  ;;  %v522_v44 = vld [vmem:[#allocation2 + $0xe8] sm:$0xff]  ;;  %v517_v46 = vld [vmem:[#allocation2 + $0xc0] sm:$0xff]  ;;  %v512_v48 = vld [vmem:[#allocation2 + $0x98] sm:$0xff] }
 0x2ae   :  { %v507_v49 = vld [vmem:[#allocation2 + $0x70] sm:$0xff] }
 0x2af   :  { %457 = vrot.lane.b32.xlu0 %v410_v50, %s1074_s16  ;;  %v454_v52 = vrot.slane %v453_v51, 1  ;;  %v363_v10 = vmax.f32 %v361_v6, %v362_v45  ;;  %v338_v21 = vmax.f32 %v336_v13, %v337_v17  ;;  %v502_v50 = vld [vmem:[#allocation2 + $0x48] sm:$0xff] }
 0x2b1   :  { %v455_v53 = vmax.f32 %v453_v51, %v454_v52  ;;  %v364_v12 = vrot.slane %v363_v10, 2  ;;  %v497_v51 = vld [vmem:[#allocation2 + $0x20] sm:$0xff] }
 0x2b3   :  { %469 = vrot.lane.b32.xlu0 %v455_v53, %s1073_s2  ;;  %461 = vrot.lane.b32.xlu1 %v455_v53, %s1075_s17  ;;  %v365_v57 = vmax.f32 %v363_v10, %v364_v12 }
 0x2b5   :  { %v366_v14 = vrot.slane %v365_v57, 1 }
 0x2b7   :  { %v367_v18 = vmax.f32 %v365_v57, %v366_v14 }
 0x2b9   :  { %v464_v23 = vsel %vm159_vm2, %v338_v21, %v367_v18 }
 0x321   :  { %v458_v19 = vpop.permute.xlu0 %457 }
 0x322   :  { %v466_v41 = vsel %vm465_vm13, %v464_v23, %v458_v19 }
 0x325   :  { %v470_v24 = vpop.permute.xlu0 %469  ;;  %v462_v26 = vpop.permute.xlu1 %461 }
 0x326   :  { %v468_v28 = vsel %vm467_vm14, %v466_v41, %v462_v26 }
 0x327   :  { %v472_v29 = vcombine.low %v468_v28, %v470_v24  ;;  %665 = vmatmul.mubr.f32.vlgmr.msra.gmra.mxu1 %v468_v28  ;;  %736 = vmatmul.mubr.f32.vlgmr.msra.gmra.mxu0 %v468_v28 }
 0x328   :  { %976 = vmatpush3.msra.mxu1 %v572_v27  ;;  %1007 = vmatprep.mubr.msk.f32.mxu1 %vm1077_vm15, %v1072_v36 }
 0x329   :  { %v479_v31 = vrot.slane %v472_v29, %v1280_v25  ;;  %977 = vmatprep.subr.mxu1 %v1072_v36 }
 0x32a   :  { %978 = vmatpush3.msra.mxu1 %v567_v30 }
 0x32b   :  { %979 = vmatprep.subr.mxu1 %v1072_v36  ;;  %v486_v34 = vrot.slane %v479_v31, %v1280_v25 }
 0x32c   :  { %980 = vmatpush3.msra.mxu1 %v562_v32 }
 0x32d   :  { %981 = vmatprep.subr.mxu1 %v1072_v36  ;;  %492 = vst.msk [vmem:[#allocation5] sm:$0x3] %vm490_vm0, %v486_v34 }
 0x32e   :  { %982 = vmatpush3.msra.mxu1 %v557_v33 }
 0x32f   :  { %983 = vmatprep.subr.mxu1 %v1072_v36 }
 0x330   :  { %984 = vmatpush3.msra.mxu1 %v552_v35 }
 0x331   :  { %985 = vmatprep.subr.mxu1 %v1072_v36 }
 0x332   :  { %986 = vmatpush3.msra.mxu1 %v547_v37 }
 0x333   :  { %987 = vmatprep.subr.mxu1 %v1072_v36 }
 0x334   :  { %988 = vmatpush3.msra.mxu1 %v542_v38 }
 0x335   :  { %989 = vmatprep.subr.mxu1 %v1072_v36 }
 0x336   :  { %990 = vmatpush3.msra.mxu1 %v537_v40 }
 0x337   :  { %991 = vmatprep.subr.mxu1 %v1072_v36 }
 0x338   :  { %992 = vmatpush3.msra.mxu1 %v532_v42 }
 0x339   :  { %993 = vmatprep.subr.mxu1 %v1072_v36 }
 0x33a   :  { %994 = vmatpush3.msra.mxu1 %v527_v43 }
 0x33b   :  { %995 = vmatprep.subr.mxu1 %v1072_v36 }
 0x33c   :  { %996 = vmatpush3.msra.mxu1 %v522_v44 }
 0x33d   :  { %997 = vmatprep.subr.mxu1 %v1072_v36 }
 0x33e   :  { %998 = vmatpush3.msra.mxu1 %v517_v46 }
 0x33f   :  { %999 = vmatprep.subr.mxu1 %v1072_v36 }
 0x340   :  { %1000 = vmatpush3.msra.mxu1 %v512_v48 }
 0x341   :  { %1001 = vmatprep.subr.mxu1 %v1072_v36 }
 0x342   :  { %1002 = vmatpush3.msra.mxu1 %v507_v49 }
 0x343   :  { %1003 = vmatprep.subr.mxu1 %v1072_v36 }
 0x344   :  { %1004 = vmatpush3.msra.mxu1 %v502_v50 }
 0x345   :  { %1005 = vmatprep.subr.mxu1 %v1072_v36 }
 0x346   :  { %1006 = vmatpush3.msra.mxu1 %v497_v51 }
 0x347   :  { %1008 = vmatmul.mubr.f32.vlgmr.msra.gmra.mxu1 %v468_v28 }
 0x348   :  { %1054 = shalt.err (!%p1051_p9)
}
 0x349   :  { %869 = dma.vmem_to_hbm [thread:$0]  %s867_s20, 32, %s1327_s6, [#allocation4]   ;;  %v581_v52 = vsub.s32 1, %v1276_v47  ;;  %v589_v36 = vsub.s32 3, %v1276_v47  ;;  %v577_v55 = vsub.s32 0, %v1276_v47  ;;  %v585_v56 = vsub.s32 2, %v1276_v47 }
 0x34a   :  { %v573_v58 = vld [vmem:[%s1326_s5] sm:$0x1f]  ;;  %v593_v7 = vsub.s32 4, %v1276_v47  ;;  %vm857_vm1 = vcmp.lt.s32.totalorder %v42_v22, 640 }
 0x34b   :  { %v582_v59 = vrot.slane %v573_v58, %v581_v52  ;;  %v590_v60 = vrot.slane %v573_v58, %v589_v36  ;;  %v578_v63 = vrot.slane %v573_v58, %v577_v55  ;;  %v586_v0 = vrot.slane %v573_v58, %v585_v56 }
 0x34c   :  { %v594_v9 = vrot.slane %v573_v58, %v593_v7 }
 0x3e7   :  { %v666_v53 = vpop.f32.mrf.mxu1  ;;  %v737_v54 = vpop.f32.mrf.mxu0 }
 0x3e8   :  { %v667_v3 = vadd.f32 %v666_v53, %v578_v63  ;;  %v738_v4 = vadd.f32 %v737_v54, %v586_v0 }
 0x3e9   :  { %v668_v61 = vpop.f32.mrf.mxu1  ;;  %v739_v62 = vpop.f32.mrf.mxu0 }
 0x3ea   :  { %v669_v1 = vadd.f32 %v668_v61, %v582_v59  ;;  %v740_v2 = vadd.f32 %v739_v62, %v590_v60 }
 0x3ec   :  { %v817_v5 = vcombine.low %v667_v3, %v669_v1  ;;  %v818_v6 = vcombine.low %v738_v4, %v740_v2 }
 0x3ee   :  { %v825_v8 = vrot.slane %v817_v5, %v1280_v25  ;;  %v832_v45 = vrot.slane %v818_v6, %v1280_v25 }
 0x3f0   :  { %v840_v11 = vcombine.low %v825_v8, %v832_v45 }
 0x3f2   :  { %v847_v13 = vrot.slane %v840_v11, %v1280_v25 }
 0x407   :  { %v808_v10 = vpop.f32.mrf.mxu1 }
 0x408   :  { %v809_v12 = vadd.f32 %v808_v10, %v594_v9 }
 0x409   :  { %v1009_v39 = vpop.f32.mrf.mxu1 }
 0x40a   :  { %v839_v57 = vrot.slane %v809_v12, %v1280_v25 }
 0x40c   :  { %v854_v14 = vrot.slane %v839_v57, %v1280_v25 }
 0x40e   :  { %v855_v15 = vcombine.low %v847_v13, %v854_v14 }
 0x410   :  { %859 = vst.msk [vmem:[%s1328_s7] sm:$0x1f] %vm857_vm1, %v855_v15 }
 0x411   :  { %1065 = dma.done.wait [#allocation4], 32  }
 0x412   :  { %1066 = vsyncadd [#allocation4], 4294967264 }
 0x413   :  { %877 = vsyncpa [#allocation3], 1 }
 0x414   :  { %878 = vsyncpa [#allocation4], 1 }

</bundles_post_ra>
